<compile_context>
chip_gen: v6e
topology: v6e:2x2x1
jax: 0.10.0
libtpu: 0.0.40
codegen_flags: <defaults>
</compile_context>

<pallas_src>
import functools

import jax
import jax.numpy as jnp
from jax import lax
from jax.experimental import pallas as pl
from jax.experimental.pallas import tpu as pltpu


# ---------------------------------------------------------------------------
# Kernel
# ---------------------------------------------------------------------------
def gru_seq_kernel(
    x_ref,      # (1, 8, IP)   x for this timestep (row 0 = real x)
    h0_ref,     # (8, HP)      initial hidden state
    wx_ref,     # (IP, 3*HP)   [W_xz.T | W_xr.T | W_xc.T]
    bzrc_ref,   # (1, 3*HP)    [b_z | b_r | b_c]
    wh_ref,     # (HP, 2*HP)   [W_hz.T | W_hr.T]
    whc_ref,    # (HP, HP)     W_hc.T
    why_ref,    # (HP, HP)     Why
    by_ref,     # (1, HP)      by
    y_ref,      # out: (1, 8, HP)
    hT_ref,     # out: (8, HP) final hidden state
    h_scr,      # scratch: (8, HP) persistent hidden state
):
    t = pl.program_id(0)
    HP = h0_ref.shape[-1]

    @pl.when(t == 0)
    def _():
        h_scr[...] = h0_ref[...]

    x = x_ref[0]            # (8, IP)
    h = h_scr[...]          # (8, HP)

    # Fused input-side and hidden-side gate projections (MXU, f32 accum).
    gx = jnp.dot(x, wx_ref[...], preferred_element_type=jnp.float32) + bzrc_ref[...]
    gh = jnp.dot(h, wh_ref[...], preferred_element_type=jnp.float32)

    z = jax.nn.sigmoid(gx[:, 0 * HP:1 * HP] + gh[:, 0 * HP:1 * HP])   # update gate
    r = jax.nn.sigmoid(gx[:, 1 * HP:2 * HP] + gh[:, 1 * HP:2 * HP])   # reset gate
    c = jnp.tanh(
        gx[:, 2 * HP:3 * HP]
        + jnp.dot(r * h, whc_ref[...], preferred_element_type=jnp.float32)
    )

    h_new = (1.0 - z) * h + z * c
    h_scr[...] = h_new
    hT_ref[...] = h_new          # cheap VMEM write; last grid step wins

    y_ref[0] = (
        jnp.dot(h_new, why_ref[...], preferred_element_type=jnp.float32)
        + by_ref[...]
    )


# ---------------------------------------------------------------------------
# Wrapper: one-time packing/padding + pallas_call over the sequence
# ---------------------------------------------------------------------------
IP = 128   # padded input size   (lane-dense contraction dim)
HP = 128   # padded hidden size  (lane-dense)
MB = 8     # sublane padding of the "batch" dim


def _place(dst, src, r0, c0):
    return dst.at[r0:r0 + src.shape[0], c0:c0 + src.shape[1]].set(src)


def pack_params(p):
    """Pre-transpose, fuse and zero-pad the parameters (done once)."""
    H = p["W_xc"].shape[0]
    I = p["W_xc"].shape[1]
    f32 = jnp.float32

    wx = jnp.zeros((IP, 3 * HP), f32)
    wx = _place(wx, p["W_xz"].T.astype(f32), 0, 0 * HP)
    wx = _place(wx, p["W_xr"].T.astype(f32), 0, 1 * HP)
    wx = _place(wx, p["W_xc"].T.astype(f32), 0, 2 * HP)

    bzrc = jnp.zeros((1, 3 * HP), f32)
    bzrc = bzrc.at[0, 0 * HP:0 * HP + H].set(p["b_z"].astype(f32))
    bzrc = bzrc.at[0, 1 * HP:1 * HP + H].set(p["b_r"].astype(f32))
    bzrc = bzrc.at[0, 2 * HP:2 * HP + H].set(p["b_c"].astype(f32))

    wh = jnp.zeros((HP, 2 * HP), f32)
    wh = _place(wh, p["W_hz"].T.astype(f32), 0, 0 * HP)
    wh = _place(wh, p["W_hr"].T.astype(f32), 0, 1 * HP)

    whc = jnp.zeros((HP, HP), f32)
    whc = _place(whc, p["W_hc"].T.astype(f32), 0, 0)

    why = jnp.zeros((HP, HP), f32)
    why = _place(why, p["Why"].astype(f32), 0, 0)

    by = jnp.zeros((1, HP), f32)
    by = by.at[0, :H].set(p["by"].astype(f32))

    return dict(wx=wx, bzrc=bzrc, wh=wh, whc=whc, why=why, by=by, H=H, I=I)


@functools.partial(jax.jit, static_argnames=("H", "I"))
def _gru_seq_call(x_pad, h0_pad, wx, bzrc, wh, whc, why, by, *, H, I):
    T = x_pad.shape[0]
    const = lambda t: (0, 0)

    y_pad, hT_pad = pl.pallas_call(
        gru_seq_kernel,
        out_shape=(
            jax.ShapeDtypeStruct((T, MB, HP), jnp.float32),
            jax.ShapeDtypeStruct((MB, HP), jnp.float32),
        ),
        grid_spec=pltpu.PrefetchScalarGridSpec(
            num_scalar_prefetch=0,
            grid=(T,),
            in_specs=[
                pl.BlockSpec((1, MB, IP), lambda t: (t, 0, 0)),   # x_t streams
                pl.BlockSpec((MB, HP), const),                    # h0 (resident)
                pl.BlockSpec((IP, 3 * HP), const),                # Wx fused
                pl.BlockSpec((1, 3 * HP), const),                 # b_zrc
                pl.BlockSpec((HP, 2 * HP), const),                # Wh fused
                pl.BlockSpec((HP, HP), const),                    # W_hc.T
                pl.BlockSpec((HP, HP), const),                    # Why
                pl.BlockSpec((1, HP), const),                     # by
            ],
            out_specs=[
                pl.BlockSpec((1, MB, HP), lambda t: (t, 0, 0)),   # y_t streams
                pl.BlockSpec((MB, HP), const),                    # final h
            ],
            scratch_shapes=[pltpu.VMEM((MB, HP), jnp.float32)],   # persistent h
        ),
        compiler_params=pltpu.CompilerParams(
            dimension_semantics=("arbitrary",),                   # recurrence
        ),
    )(x_pad, h0_pad, wx, bzrc, wh, whc, why, by)

    return y_pad[:, 0, :H], hT_pad[0, :H]


def gru_forward_seq(x_seq, h0, packed):
    """x_seq: (T, input_size), h0: (hidden_size,). Returns (y_seq (T,H), h_T (H,))."""
    H, I = packed["H"], packed["I"]
    T = x_seq.shape[0]
    x_pad = jnp.zeros((T, MB, IP), jnp.float32)
    x_pad = x_pad.at[:, 0, :I].set(x_seq.astype(jnp.float32))
    h0_pad = jnp.zeros((MB, HP), jnp.float32)
    h0_pad = h0_pad.at[0, :H].set(h0.astype(jnp.float32))
    return _gru_seq_call(
        x_pad, h0_pad,
        packed["wx"], packed["bzrc"], packed["wh"], packed["whc"],
        packed["why"], packed["by"],
        H=H, I=I,
    )


# ---------------------------------------------------------------------------
# Param init + pure-JAX reference
# ---------------------------------------------------------------------------
def init_params(key, input_size, hidden_size):
    ks = jax.random.split(key, 8)
    p = {
        "W_xc": jax.random.normal(ks[0], (hidden_size, input_size), jnp.float32),
        "W_hc": jax.random.normal(ks[1], (hidden_size, hidden_size), jnp.float32),
        "b_c": jnp.zeros((hidden_size,), jnp.float32),
        "W_xr": jax.random.normal(ks[2], (hidden_size, input_size), jnp.float32),
        "W_hr": jax.random.normal(ks[3], (hidden_size, hidden_size), jnp.float32),
        "b_r": jax.random.normal(ks[4], (hidden_size,), jnp.float32),
        "W_xz": jax.random.normal(ks[5], (hidden_size, input_size), jnp.float32),
        "W_hz": jax.random.normal(ks[6], (hidden_size, hidden_size), jnp.float32),
        "b_z": jax.random.normal(ks[7], (hidden_size,), jnp.float32),
    }
    # Fabricated output projection (undefined in the PyTorch __init__, see TODO).
    p["Why"] = jax.random.normal(
        jax.random.PRNGKey(1), (hidden_size, hidden_size), jnp.float32)
    p["by"] = jnp.zeros((hidden_size,), jnp.float32)
    return p


def reference_seq(x_seq, h0, p):
    def step(h, x):
        z = jax.nn.sigmoid(p["W_xz"] @ x + (p["W_hz"] @ h + p["b_z"]))
        r = jax.nn.sigmoid(p["W_xr"] @ x + (p["W_hr"] @ h + p["b_r"]))
        c = jnp.tanh(p["W_xc"] @ x + (p["W_hc"] @ (r * h) + p["b_c"]))
        h_new = (1.0 - z) * h + z * c
        y = h_new @ p["Why"] + p["by"]
        return h_new, y
    h_T, ys = lax.scan(step, h0, x_seq)
    return ys, h_T


# ---------------------------------------------------------------------------
if __name__ == "__main__":
    input_size, hidden_size, seq_len = 16, 32, 8
    key = jax.random.PRNGKey(0)
    kx, kp = jax.random.split(key)

    params = init_params(kp, input_size, hidden_size)
    packed = pack_params(params)

    x_seq = jax.random.normal(kx, (seq_len, input_size), jnp.float32)
    h0 = jnp.zeros((hidden_size,), jnp.float32)       # self.h initialized to zeros

    y_seq, h_T = gru_forward_seq(x_seq, h0, packed)
    y_seq = jax.block_until_ready(y_seq)
    h_T = jax.block_until_ready(h_T)

    y_ref, h_ref = reference_seq(x_seq, h0, params)
    assert jnp.allclose(y_seq, y_ref, atol=1e-4, rtol=1e-4), "y mismatch"
    assert jnp.allclose(h_T, h_ref, atol=1e-4, rtol=1e-4), "h mismatch"

    print("KERNEL_OK")
</pallas_src>

<mosaic_0001>
module attributes {stable_mosaic.version = 11 : i64} {
  func.func @gru_seq_kernel(%arg0: i32, %arg1: memref<1x8x128xf32, #tpu.memory_space<vmem>>, %arg2: memref<8x128xf32, #tpu.memory_space<vmem>>, %arg3: memref<128x384xf32, #tpu.memory_space<vmem>>, %arg4: memref<1x384xf32, #tpu.memory_space<vmem>>, %arg5: memref<128x256xf32, #tpu.memory_space<vmem>>, %arg6: memref<128x128xf32, #tpu.memory_space<vmem>>, %arg7: memref<128x128xf32, #tpu.memory_space<vmem>>, %arg8: memref<1x128xf32, #tpu.memory_space<vmem>>, %arg9: memref<1x8x128xf32, #tpu.memory_space<vmem>>, %arg10: memref<8x128xf32, #tpu.memory_space<vmem>>, %arg11: memref<8x128xf32, #tpu.memory_space<vmem>>) attributes {dimension_semantics = [#tpu.dimension_semantics<arbitrary>], iteration_bounds = array<i64: 8>, scalar_prefetch = 0 : i64, scratch_operands = 1 : i64, tpu.core_type = #tpu.core_type<tc>, window_params = [{transform_indices = @transform_0, window_bounds = array<i64: 1, 8, 128>}, {pipeline_mode = #tpu.pipeline_mode<synchronous>, transform_indices = @transform_1, window_bounds = array<i64: 8, 128>}, {pipeline_mode = #tpu.pipeline_mode<synchronous>, transform_indices = @transform_2, window_bounds = array<i64: 128, 384>}, {pipeline_mode = #tpu.pipeline_mode<synchronous>, transform_indices = @transform_3, window_bounds = array<i64: 1, 384>}, {pipeline_mode = #tpu.pipeline_mode<synchronous>, transform_indices = @transform_4, window_bounds = array<i64: 128, 256>}, {pipeline_mode = #tpu.pipeline_mode<synchronous>, transform_indices = @transform_5, window_bounds = array<i64: 128, 128>}, {pipeline_mode = #tpu.pipeline_mode<synchronous>, transform_indices = @transform_6, window_bounds = array<i64: 128, 128>}, {pipeline_mode = #tpu.pipeline_mode<synchronous>, transform_indices = @transform_7, window_bounds = array<i64: 1, 128>}, {transform_indices = @transform_8, window_bounds = array<i64: 1, 8, 128>}, {pipeline_mode = #tpu.pipeline_mode<synchronous>, transform_indices = @transform_9, window_bounds = array<i64: 8, 128>}]} {
    %c0_i32 = arith.constant 0 : i32
    %0 = arith.cmpi eq, %arg0, %c0_i32 : i32
    %1 = arith.extui %0 : i1 to i32
    %c0_i32_0 = arith.constant 0 : i32
    %2 = arith.cmpi ne, %1, %c0_i32_0 : i32
    scf.if %2 {
      %c0_30 = arith.constant 0 : index
      %c0_31 = arith.constant 0 : index
      %50 = vector.load %arg2[%c0_30, %c0_31] : memref<8x128xf32, #tpu.memory_space<vmem>>, vector<8x128xf32>
      %c0_32 = arith.constant 0 : index
      %c0_33 = arith.constant 0 : index
      %51 = vector.load %arg11[%c0_32, %c0_33] : memref<8x128xf32, #tpu.memory_space<vmem>>, vector<8x128xf32>
      tpu.vector_store %arg11[%c0_32, %c0_33], %50 {strides = array<i32>} : memref<8x128xf32, #tpu.memory_space<vmem>>, vector<8x128xf32>,
    } else {
    }
    %c0 = arith.constant 0 : index
    %c0_1 = arith.constant 0 : index
    %c0_2 = arith.constant 0 : index
    %3 = vector.load %arg1[%c0, %c0_1, %c0_2] : memref<1x8x128xf32, #tpu.memory_space<vmem>>, vector<1x8x128xf32>
    %4 = vector.shape_cast %3 : vector<1x8x128xf32> to vector<8x128xf32>
    %c0_3 = arith.constant 0 : index
    %c0_4 = arith.constant 0 : index
    %5 = vector.load %arg11[%c0_3, %c0_4] : memref<8x128xf32, #tpu.memory_space<vmem>>, vector<8x128xf32>
    %c0_5 = arith.constant 0 : index
    %c0_6 = arith.constant 0 : index
    %6 = vector.load %arg3[%c0_5, %c0_6] : memref<128x384xf32, #tpu.memory_space<vmem>>, vector<128x384xf32>
    %cst = arith.constant dense<0.000000e+00> : vector<8x384xf32>
    %7 = tpu.matmul %4, %6, %cst {dimension_numbers = #tpu.dot_dimension_numbers<[1], [0], [0], [1], [0, 0, 1, 1], [], []>} : vector<8x128xf32>, vector<128x384xf32>, vector<8x384xf32> -> vector<8x384xf32>
    %c0_7 = arith.constant 0 : index
    %c0_8 = arith.constant 0 : index
    %8 = vector.load %arg4[%c0_7, %c0_8] : memref<1x384xf32, #tpu.memory_space<vmem>>, vector<1x384xf32>
    %9 = vector.broadcast %8 : vector<1x384xf32> to vector<8x384xf32>
    %10 = arith.addf %7, %9 : vector<8x384xf32>
    %c0_9 = arith.constant 0 : index
    %c0_10 = arith.constant 0 : index
    %11 = vector.load %arg5[%c0_9, %c0_10] : memref<128x256xf32, #tpu.memory_space<vmem>>, vector<128x256xf32>
    %cst_11 = arith.constant dense<0.000000e+00> : vector<8x256xf32>
    %12 = tpu.matmul %5, %11, %cst_11 {dimension_numbers = #tpu.dot_dimension_numbers<[1], [0], [0], [1], [0, 0, 1, 1], [], []>} : vector<8x128xf32>, vector<128x256xf32>, vector<8x256xf32> -> vector<8x256xf32>
    %13 = vector.extract_strided_slice %10 {offsets = [0, 0], sizes = [8, 128], strides = [1, 1]} : vector<8x384xf32> to vector<8x128xf32>
    %14 = vector.extract_strided_slice %12 {offsets = [0, 0], sizes = [8, 128], strides = [1, 1]} : vector<8x256xf32> to vector<8x128xf32>
    %15 = arith.addf %13, %14 : vector<8x128xf32>
    %16 = arith.negf %15 : vector<8x128xf32>
    %17 = math.exp %16 : vector<8x128xf32>
    %cst_12 = arith.constant 1.000000e+00 : f32
    %18 = vector.broadcast %cst_12 : f32 to vector<8x128xf32>
    %19 = arith.addf %18, %17 : vector<8x128xf32>
    %20 = arith.divf %18, %19 : vector<8x128xf32>
    %21 = vector.extract_strided_slice %10 {offsets = [0, 128], sizes = [8, 128], strides = [1, 1]} : vector<8x384xf32> to vector<8x128xf32>
    %22 = vector.extract_strided_slice %12 {offsets = [0, 128], sizes = [8, 128], strides = [1, 1]} : vector<8x256xf32> to vector<8x128xf32>
    %23 = arith.addf %21, %22 : vector<8x128xf32>
    %24 = arith.negf %23 : vector<8x128xf32>
    %25 = math.exp %24 : vector<8x128xf32>
    %cst_13 = arith.constant 1.000000e+00 : f32
    %26 = vector.broadcast %cst_13 : f32 to vector<8x128xf32>
    %27 = arith.addf %26, %25 : vector<8x128xf32>
    %28 = arith.divf %26, %27 : vector<8x128xf32>
    %29 = vector.extract_strided_slice %10 {offsets = [0, 256], sizes = [8, 128], strides = [1, 1]} : vector<8x384xf32> to vector<8x128xf32>
    %30 = arith.mulf %28, %5 : vector<8x128xf32>
    %c0_14 = arith.constant 0 : index
    %c0_15 = arith.constant 0 : index
    %31 = vector.load %arg6[%c0_14, %c0_15] : memref<128x128xf32, #tpu.memory_space<vmem>>, vector<128x128xf32>
    %cst_16 = arith.constant dense<0.000000e+00> : vector<8x128xf32>
    %32 = tpu.matmul %30, %31, %cst_16 {dimension_numbers = #tpu.dot_dimension_numbers<[1], [0], [0], [1], [0, 0, 1, 1], [], []>} : vector<8x128xf32>, vector<128x128xf32>, vector<8x128xf32> -> vector<8x128xf32>
    %33 = arith.addf %29, %32 : vector<8x128xf32>
    %34 = math.tanh %33 : vector<8x128xf32>
    %cst_17 = arith.constant 1.000000e+00 : f32
    %35 = vector.broadcast %cst_17 : f32 to vector<8x128xf32>
    %36 = arith.subf %35, %20 : vector<8x128xf32>
    %37 = arith.mulf %36, %5 : vector<8x128xf32>
    %38 = arith.mulf %20, %34 : vector<8x128xf32>
    %39 = arith.addf %37, %38 : vector<8x128xf32>
    %c0_18 = arith.constant 0 : index
    %c0_19 = arith.constant 0 : index
    %40 = vector.load %arg11[%c0_18, %c0_19] : memref<8x128xf32, #tpu.memory_space<vmem>>, vector<8x128xf32>
    tpu.vector_store %arg11[%c0_18, %c0_19], %39 {strides = array<i32>} : memref<8x128xf32, #tpu.memory_space<vmem>>, vector<8x128xf32>,
    %c0_20 = arith.constant 0 : index
    %c0_21 = arith.constant 0 : index
    %41 = vector.load %arg10[%c0_20, %c0_21] : memref<8x128xf32, #tpu.memory_space<vmem>>, vector<8x128xf32>
    tpu.vector_store %arg10[%c0_20, %c0_21], %39 {strides = array<i32>} : memref<8x128xf32, #tpu.memory_space<vmem>>, vector<8x128xf32>,
    %c0_22 = arith.constant 0 : index
    %c0_23 = arith.constant 0 : index
    %42 = vector.load %arg7[%c0_22, %c0_23] : memref<128x128xf32, #tpu.memory_space<vmem>>, vector<128x128xf32>
    %cst_24 = arith.constant dense<0.000000e+00> : vector<8x128xf32>
    %43 = tpu.matmul %39, %42, %cst_24 {dimension_numbers = #tpu.dot_dimension_numbers<[1], [0], [0], [1], [0, 0, 1, 1], [], []>} : vector<8x128xf32>, vector<128x128xf32>, vector<8x128xf32> -> vector<8x128xf32>
    %c0_25 = arith.constant 0 : index
    %c0_26 = arith.constant 0 : index
    %44 = vector.load %arg8[%c0_25, %c0_26] : memref<1x128xf32, #tpu.memory_space<vmem>>, vector<1x128xf32>
    %45 = vector.broadcast %44 : vector<1x128xf32> to vector<8x128xf32>
    %46 = arith.addf %43, %45 : vector<8x128xf32>
    %c0_27 = arith.constant 0 : index
    %c0_28 = arith.constant 0 : index
    %c0_29 = arith.constant 0 : index
    %47 = vector.load %arg9[%c0_27, %c0_28, %c0_29] : memref<1x8x128xf32, #tpu.memory_space<vmem>>, vector<1x8x128xf32>
    %48 = vector.shape_cast %47 : vector<1x8x128xf32> to vector<8x128xf32>
    %49 = vector.shape_cast %46 : vector<8x128xf32> to vector<1x8x128xf32>
    tpu.vector_store %arg9[%c0_27, %c0_28, %c0_29], %49 {strides = array<i32>} : memref<1x8x128xf32, #tpu.memory_space<vmem>>, vector<1x8x128xf32>,
    return
  }
  func.func @transform_0(%arg0: i32) -> (i32, i32, i32) {
    %c0_i32 = arith.constant 0 : i32
    %c0_i32_0 = arith.constant 0 : i32
    %c0_i32_1 = arith.constant 0 : i32
    return %arg0, %c0_i32, %c0_i32_0 : i32, i32, i32
  }
  func.func @transform_1(%arg0: i32) -> (i32, i32) {
    %c0_i32 = arith.constant 0 : i32
    %c0_i32_0 = arith.constant 0 : i32
    %c0_i32_1 = arith.constant 0 : i32
    return %c0_i32, %c0_i32_0 : i32, i32
  }
  func.func @transform_2(%arg0: i32) -> (i32, i32) {
    %c0_i32 = arith.constant 0 : i32
    %c0_i32_0 = arith.constant 0 : i32
    %c0_i32_1 = arith.constant 0 : i32
    return %c0_i32, %c0_i32_0 : i32, i32
  }
  func.func @transform_3(%arg0: i32) -> (i32, i32) {
    %c0_i32 = arith.constant 0 : i32
    %c0_i32_0 = arith.constant 0 : i32
    %c0_i32_1 = arith.constant 0 : i32
    return %c0_i32, %c0_i32_0 : i32, i32
  }
  func.func @transform_4(%arg0: i32) -> (i32, i32) {
    %c0_i32 = arith.constant 0 : i32
    %c0_i32_0 = arith.constant 0 : i32
    %c0_i32_1 = arith.constant 0 : i32
    return %c0_i32, %c0_i32_0 : i32, i32
  }
  func.func @transform_5(%arg0: i32) -> (i32, i32) {
    %c0_i32 = arith.constant 0 : i32
    %c0_i32_0 = arith.constant 0 : i32
    %c0_i32_1 = arith.constant 0 : i32
    return %c0_i32, %c0_i32_0 : i32, i32
  }
  func.func @transform_6(%arg0: i32) -> (i32, i32) {
    %c0_i32 = arith.constant 0 : i32
    %c0_i32_0 = arith.constant 0 : i32
    %c0_i32_1 = arith.constant 0 : i32
    return %c0_i32, %c0_i32_0 : i32, i32
  }
  func.func @transform_7(%arg0: i32) -> (i32, i32) {
    %c0_i32 = arith.constant 0 : i32
    %c0_i32_0 = arith.constant 0 : i32
    %c0_i32_1 = arith.constant 0 : i32
    return %c0_i32, %c0_i32_0 : i32, i32
  }
  func.func @transform_8(%arg0: i32) -> (i32, i32, i32) {
    %c0_i32 = arith.constant 0 : i32
    %c0_i32_0 = arith.constant 0 : i32
    %c0_i32_1 = arith.constant 0 : i32
    return %arg0, %c0_i32, %c0_i32_0 : i32, i32, i32
  }
  func.func @transform_9(%arg0: i32) -> (i32, i32) {
    %c0_i32 = arith.constant 0 : i32
    %c0_i32_0 = arith.constant 0 : i32
    %c0_i32_1 = arith.constant 0 : i32
    return %c0_i32, %c0_i32_0 : i32, i32
  }
}

</mosaic_0001>

<bundles_post_ra>
// kernel: _gru_seq_call.1
= control target key start
LH: loop header
LB: loop body
LE: loop exit
PB: predicated region body
PF: predicated region fallthrough
CT: control target
= control target key end

     0   :  { %15 = vsyncpa [#allocation4], 0  ;;  %s1872_s0 = inlined_call_operand.hbm [shape: f32[8,8,128], index: 0, kind: input, shape index: {}]   ;;  %s1873_s1 = inlined_call_operand.hbm [shape: f32[8,128], index: 1, kind: input, shape index: {}]   ;;  %s1874_s2 = inlined_call_operand.hbm [shape: f32[128,384], index: 2, kind: input, shape index: {}]   ;;  %s1875_s3 = inlined_call_operand.vmem [shape: f32[1,384], index: 3, kind: input, shape index: {}]   ;;  %s1876_s4 = inlined_call_operand.hbm [shape: f32[128,256], index: 4, kind: input, shape index: {}]   ;;  %s1877_s5 = inlined_call_operand.hbm [shape: f32[128,128], index: 5, kind: input, shape index: {}]   ;;  %s1878_s6 = inlined_call_operand.hbm [shape: f32[128,128], index: 6, kind: input, shape index: {}]   ;;  %s1879_s7 = inlined_call_operand.vmem [shape: f32[1,128], index: 7, kind: input, shape index: {}]   ;;  %s1880_s8 = inlined_call_operand.vmem [shape: f32[8,8,128], index: 8, kind: output, shape index: {0}]   ;;  %s1881_s9 = inlined_call_operand.vmem [shape: f32[8,128], index: 9, kind: output, shape index: {1}]  }
   0x1   :  { %17 = vsyncpa [#allocation4 + $0x1], 0 }
   0x2   :  { %18 = vsyncpa [#allocation6], 0 }
   0x3   :  { %19 = vsyncpa [#allocation9], 0 }
   0x4   :  { %20 = vsyncpa [#allocation12], 0  ;;  %s1614_s30 = smov 0   ;;  %s1616_s10 = smov 0  }
   0x5   :  { %s1618_s11 = smov 0   ;;  %s1620_s12 = smov 0  }
   0x6 LB: > { %s1550_s13 = smov [#allocation5]   ;;  %s1635_s15 = sadd.s32 4294967295, %s1548_s12   ;;  %s1548_s12 = sphi %s1620_s12, %s1902_s12   ;;  %s1544_s11 = sphi %s1618_s11, %s1901_s11   ;;  %s1540_s10 = sphi %s1616_s10, %s1900_s10   ;;  %s1536_s30 = sphi %s1614_s30, %s1899_s30  }
   0x7   : > { %s264_s14 = sshll.u32 %s1550_s13, 4  ;;  %p1057_p0 = scmp.ge.s32.totalorder %s1548_s12, 1  ;;  %s265_s14 = int_to_ptr.vmem [resolvable:$true] %s264_s14 }
   0x8   : > { %p1882_p1 = scmp.eq.s32.totalorder %s1635_s15, 0  ;;  %p251_p2 = scmp.lt.s32.totalorder %s1548_s12, 9 }
   0x9   : > { %s1551_s17 = smov [#allocation8]   ;;  %s1552_s20 = smov [#allocation7]  }
   0xa   : > { %p1641_p4 = pnand %p1057_p0, %p251_p2  ;;  %s290_s18 = sshll.u32 %s1551_s17, 4  ;;  %s1647_s18 = int_to_ptr.vmem [resolvable:$true] %s290_s18 }
   0xb   : > { %s274_s21 = sshll.u32 %s1552_s20, 4  ;;  %s1355_s23 = scalar_lea.vmem %s265_s14, 128  ;;  %s1655_s21 = int_to_ptr.vmem [resolvable:$true] %s274_s21 }
   0xc   : > { %s1885_s16 = scalar_select %p1641_p4, 1, 0 }
   0xd   : > { %p1258_p5 = pneg %p1641_p4  ;;  %p1356_p8 = scmp.ne.s32.totalorder %s265_s14, %s1355_s23 }
   0xe   : > { %p1363_p11 = scmp.lt.s32.totalorder %s265_s14, %s265_s14  ;;  %p1364_p12 = scmp.lt.s32.totalorder %s1355_s23, %s1355_s23 }
   0xf   : > { %p1651_p6 = pnand %p1258_p5, %p1882_p1 }
  0x10   : > { %p1365_p13 = por %p1364_p12, %p1363_p11 }
  0x11   : > { %p1659_p7 = pneg %p1651_p6 }
  0x13   : > { %p1358_p9 = pnand %p1356_p8, %p1659_p7 }
  0x15   : > { %p1359_p10 = pneg %p1358_p9 }
  0x17   : > { %p1366_p0 = pnand %p1365_p13, %p1359_p10 }
  0x19   : > { %1369 = shalt.err (!%p1366_p0)
}
  0x1a   : > { %1261 = dma.hbm_to_vmem [thread:$0]  (!%p1651_p6), %s1873_s1, 128, %s265_s14, [#allocation6]  }
  0x1b   : > { %s1381_s26 = scalar_lea.vmem %s1647_s18, 4096  ;;  %p1389_p9 = scmp.lt.s32.totalorder %s1647_s18, %s1647_s18 }
  0x1c   : > { %p1382_p2 = scmp.ne.s32.totalorder %s1647_s18, %s1381_s26  ;;  %p1390_p11 = scmp.lt.s32.totalorder %s1381_s26, %s1381_s26 }
  0x1e   : > { %p1384_p5 = pnand %p1382_p2, %p1659_p7  ;;  %p1391_p10 = por %p1390_p11, %p1389_p9 }
  0x20   : > { %p1385_p8 = pneg %p1384_p5 }
  0x22   : > { %p1392_p12 = pnand %p1391_p10, %p1385_p8 }
  0x24   : > { %1395 = shalt.err (!%p1392_p12)
}
  0x25   : > { %s1553_s27 = smov 256   ;;  %s1554_s28 = smov 16  }
  0x26   : > { %1267 = dma.hbm_to_vmem [thread:$0]  (!%p1651_p6), %s1876_s4, 4096, %s1647_s18, [#allocation9], %s1553_s27, %s1553_s27, %s1554_s28  }
  0x27   : > { %s1407_s14 = scalar_lea.vmem %s1655_s21, 6144  ;;  %p1415_p5 = scmp.lt.s32.totalorder %s1655_s21, %s1655_s21 }
  0x28   : > { %p1408_p13 = scmp.ne.s32.totalorder %s1655_s21, %s1407_s14  ;;  %p1416_p8 = scmp.lt.s32.totalorder %s1407_s14, %s1407_s14 }
  0x2a   : > { %p1410_p0 = pnand %p1408_p13, %p1659_p7  ;;  %p1417_p9 = por %p1416_p8, %p1415_p5 }
  0x2c   : > { %p1411_p2 = pneg %p1410_p0 }
  0x2e   : > { %p1418_p11 = pnand %p1417_p9, %p1411_p2 }
  0x30   : > { %1421 = shalt.err (!%p1418_p11)
}
  0x31   : > { %s1555_s17 = smov 384   ;;  %s1556_s20 = smov 24  }
  0x32   : > { %1264 = dma.hbm_to_vmem [thread:$0]  (!%p1651_p6), %s1874_s2, 6144, %s1655_s21, [#allocation6], %s1555_s17, %s1555_s17, %s1556_s20  }
  0x33   : > { %s1557_s18 = smov [#allocation10]  }
  0x34   : > { %s303_s25 = sshll.u32 %s1557_s18, 4  ;;  %s304_s25 = int_to_ptr.vmem [resolvable:$true] %s303_s25 }
  0x35   : > { %s1433_s26 = scalar_lea.vmem %s304_s25, 2048  ;;  %p1441_p0 = scmp.lt.s32.totalorder %s304_s25, %s304_s25 }
  0x36   : > { %p1434_p10 = scmp.ne.s32.totalorder %s304_s25, %s1433_s26  ;;  %p1442_p2 = scmp.lt.s32.totalorder %s1433_s26, %s1433_s26 }
  0x38   : > { %p1436_p12 = pnand %p1434_p10, %p1659_p7  ;;  %p1443_p5 = por %p1442_p2, %p1441_p0 }
  0x3a   : > { %p1437_p13 = pneg %p1436_p12 }
  0x3c   : > { %p1444_p8 = pnand %p1443_p5, %p1437_p13 }
  0x3e   : > { %1447 = shalt.err (!%p1444_p8)
}
  0x3f   : > { %s1558_s27 = smov 128   ;;  %s1559_s28 = smov 8  }
  0x40   : > { %1270 = dma.hbm_to_vmem [thread:$0]  (!%p1651_p6), %s1877_s5, 2048, %s304_s25, [#allocation9], %s1558_s27, %s1558_s27, %s1559_s28  }
  0x41   : > { %s1560_s13 = smov [#allocation11]  }
  0x42   : > { %s316_s14 = sshll.u32 %s1560_s13, 4  ;;  %s317_s14 = int_to_ptr.vmem [resolvable:$true] %s316_s14 }
  0x43   : > { %s1459_s17 = scalar_lea.vmem %s317_s14, 2048  ;;  %p1467_p12 = scmp.lt.s32.totalorder %s317_s14, %s317_s14 }
  0x44   : > { %p1460_p9 = scmp.ne.s32.totalorder %s317_s14, %s1459_s17  ;;  %p1468_p13 = scmp.lt.s32.totalorder %s1459_s17, %s1459_s17 }
  0x46   : > { %p1462_p11 = pnand %p1460_p9, %p1659_p7  ;;  %p1469_p0 = por %p1468_p13, %p1467_p12 }
  0x48   : > { %p1463_p10 = pneg %p1462_p11 }
  0x4a   : > { %p1470_p2 = pnand %p1469_p0, %p1463_p10 }
  0x4c   : > { %1473 = shalt.err (!%p1470_p2)
}
  0x4d   : > { %1273 = dma.hbm_to_vmem [thread:$0]  (!%p1651_p6), %s1878_s6, 2048, %s317_s14, [#allocation12], %s1558_s27, %s1558_s27, %s1559_s28  }
  0x4e   : > { %s1709_s22 = sadd.s32 1, %s1548_s12   ;;  %s33_s24 = sadd.s32 1, %s1544_s11 }
  0x4f   : > { %s30_s19 = ssub.s32 %s1548_s12, %s1709_s22  ;;  %p40_p5 = scmp.ne.s32.totalorder %s1544_s11, %s1540_s10 }
  0x50   : > { %p31_p7 = scmp.eq.s32.totalorder %s30_s19, 0  ;;  %p41_p8 = scmp.eq.s32.totalorder %s1548_s12, 0 }
  0x51   : > { %p46_p9 = scmp.ne.s32.totalorder %s1540_s10, %s1536_s30  ;;  %p1283_p12 = scmp.lt.s32.totalorder %s1548_s12, 8 }
  0x52   : > { %s1720_s18 = scalar_select %p31_p7, %s1544_s11, %s33_s24  }
  0x53   : > { %p42_p11 = por %p41_p8, %p40_p5  ;;  %p1724_p10 = por %p1882_p1, %p46_p9 }
  0x54   : > { %s333_s26 = sand.u32 1, %s1544_s11   ;;  %s1065_s28 = sshll.u32 %s1548_s12, 7 }
  0x55   : > { %s1888_s25 = scalar_select %p1724_p10, 1, 0 }
  0x56   : > { %s1064_s27 = sshll.u32 %s333_s26, 3  ;;  %s1734_s13 = scalar_lea.hbm %s1872_s0, %s1065_s28 }
  0x57   : > { %s337_s30 = scalar_lea.vmem [#allocation3], %s1064_s27  ;;  %p1736_p6 = pnand %p1283_p12, %p42_p11 }
  0x58   : > { %s344_s14 = sshll.u32 %s337_s30, 4  ;;  %s334_s20 = scalar_lea.sflag [#allocation4], %s333_s26  ;;  %s345_s14 = int_to_ptr.vmem [resolvable:$true] %s344_s14 }
  0x59   : > { %s1474_s23 = scalar_lea.hbm %s1734_s13, 128  ;;  %p1476_p0 = pneg %p1736_p6 }
  0x5a   : > { %p1475_p13 = scmp.ne.s32.totalorder %s1734_s13, %s1474_s23  ;;  %s1479_s24 = scalar_lea.hbm %s1872_s0, 1024 }
  0x5b   : > { %p1480_p5 = scmp.lt.s32.totalorder %s1734_s13, %s1872_s0  ;;  %p1481_p8 = scmp.lt.s32.totalorder %s1479_s24, %s1474_s23 }
  0x5c   : > { %p1477_p2 = pnand %p1476_p0, %p1475_p13 }
  0x5d   : > { %p1482_p9 = por %p1481_p8, %p1480_p5 }
  0x5e   : > { %p1478_p7 = pneg %p1477_p2 }
  0x60   : > { %p1483_p11 = pnand %p1482_p9, %p1478_p7 }
  0x62   : > { %1486 = shalt.err (!%p1483_p11)
}
  0x63   : > { %s1487_s29 = scalar_lea.vmem %s345_s14, 128  ;;  %s1561_s26 = smov [#allocation3]  }
  0x64   : > { %p1488_p12 = scmp.ne.s32.totalorder %s345_s14, %s1487_s29  ;;  %s1492_s21 = sshll.u32 %s1561_s26, 4  ;;  %s1493_s21 = int_to_ptr.vmem [resolvable:$false] %s1492_s21 }
  0x65   : > { %s1494_s30 = scalar_lea.vmem %s1493_s21, 256  ;;  %p1495_p13 = scmp.lt.s32.totalorder %s345_s14, %s1493_s21 }
  0x66   : > { %p1490_p3 = pnand %p1488_p12, %p1476_p0  ;;  %p1496_p2 = scmp.lt.s32.totalorder %s1494_s30, %s1487_s29 }
  0x68   : > { %p1491_p1 = pneg %p1490_p3  ;;  %p1497_p10 = por %p1496_p2, %p1495_p13 }
  0x6a   : > { %p1498_p4 = pnand %p1497_p10, %p1491_p1 }
  0x6c   : > { %1501 = shalt.err (!%p1498_p4)
}
  0x6d   : > { %1277 = dma.hbm_to_vmem [thread:$0]  (!%p1736_p6), %s1734_s13, 128, %s345_s14, %s334_s20  }
  0x6e   : > { %p1890_p7 = scmp.ne.s32.totalorder %s1885_s16, 0 }
  0x6f   : > { %s355_s23 = sand.u32 (!%p1890_p7), 1, %s1540_s10   ;;  %p1891_p3 = scmp.ne.s32.totalorder (!%p1890_p7), %s1888_s25, 0 }
  0x70   : > { %353 = sbr.rel (%p1890_p7) target bundleno = 842 (0x34a), region = 52  ;;  %s1757_s12 = sshll.u32 (!%p1890_p7), %s355_s23, 3 }
  0x71   : > { %s356_s19 = scalar_lea.sflag (!%p1890_p7), [#allocation4], %s355_s23  ;;  %s359_s24 = scalar_lea.vmem (!%p1890_p7), [#allocation3], %s1757_s12 }
  0x75   : > { %1519 = dma.done.wait (%p1891_p3), %s356_s19, 128  }
  0x76   : > { %1521 = vsyncadd (%p1891_p3), %s356_s19, 4294967168  ;;  %p1892_p1 = scmp.eq.s32.totalorder %s1635_s15, 0 }
  0x78   : > { %1523 = dma.done.wait (%p1892_p1), [#allocation6], 6272   ;;  %p1893_p4 = pmov %p1892_p1 }
  0x79   : > { %p1894_p10 = pmov %p1892_p1 }
  0x7a   : > { %1525 = vsyncadd (%p1893_p4), [#allocation6], 4294961024 }
  0x7b   : > { %1527 = dma.done.wait (%p1894_p10), [#allocation9], 6144   ;;  %p1895_p6 = pmov %p1892_p1 }
  0x7c   : > { %p1896_p0 = pmov %p1892_p1 }
  0x7d   : > { %1529 = vsyncadd (%p1895_p6), [#allocation9], 4294961152 }
  0x7e   : > { %1531 = dma.done.wait (%p1896_p0), [#allocation12], 2048   ;;  %p1897_p5 = pmov %p1896_p0 }
  0x7f   : > { %p413_p8 = scmp.lt.s32.totalorder %s1635_s15, 7  ;;  %p1898_p9 = scmp.ne.s32.totalorder %s1635_s15, 0 }
  0x80   : > { %1533 = vsyncadd (%p1897_p5), [#allocation12], 4294965248 }
  0x81   : > { %s414_s16 = scalar_select %p413_p8, %s1635_s15, 7 }
  0x82   : > { %420 = sbr.rel (%p1898_p9) target bundleno = 137 (0x89), region = 80 }
  0x83   : > { %s1073_s25 = sshll.u32 %s414_s16, 3 }
  0x84   : > { %s1781_s17 = scalar_lea.vmem %s1880_s8, %s1073_s25 }
  0x87   : > { %v421_v0 = vld [vmem:[#allocation5] sm:$0xff] }
  0x88   : > { %422 = vst [vmem:[#allocation2] sm:$0xff] %v421_v0 }
  0x89 PF: > { %v471_v1 = vld [vmem:[#allocation7 + $0x170] sm:$0xff]  ;;  %v470_v2 = vld [vmem:[#allocation7 + $0x168] sm:$0xff]  ;;  %v468_v3 = vld [vmem:[#allocation7 + $0x158] sm:$0xff]  ;;  %v1562_v5 = vmov 0.0   ;;  %vm1563_vm0 = vmmov 0  }
  0x8a   : > { %490 = vmatprep.subr.mxu0 %v471_v1  ;;  %v467_v4 = vld [vmem:[#allocation7 + $0x150] sm:$0xff]  ;;  %554 = vmatprep.mubr.f32.mxu0 %v1562_v5  ;;  %v465_v6 = vld [vmem:[#allocation7 + $0x140] sm:$0xff]  ;;  %v464_v7 = vld [vmem:[#allocation7 + $0x138] sm:$0xff] }
  0x8b   : > { %491 = vmatpush1.msra.mxu0 %v470_v2  ;;  %1131 = vmatprep.subr.mxu1 %v1562_v5  ;;  %v462_v8 = vld [vmem:[#allocation7 + $0x128] sm:$0xff]  ;;  %v461_v9 = vld [vmem:[#allocation7 + $0x120] sm:$0xff]  ;;  %v459_v10 = vld [vmem:[#allocation7 + $0x110] sm:$0xff] }
  0x8c   : > { %492 = vmatprep.subr.mxu0 %v468_v3  ;;  %v458_v11 = vld [vmem:[#allocation7 + $0x108] sm:$0xff]  ;;  %v456_v12 = vld [vmem:[#allocation7 + $0xf8] sm:$0xff]  ;;  %v455_v13 = vld [vmem:[#allocation7 + $0xf0] sm:$0xff]  ;;  %1163 = vmatprep.mubr.msk.f32.mxu1 %vm1563_vm0, %v1562_v5 }
  0x8d   : > { %493 = vmatpush1.msra.mxu0 %v467_v4  ;;  %v453_v14 = vld [vmem:[#allocation7 + $0xe0] sm:$0xff]  ;;  %v452_v15 = vld [vmem:[#allocation7 + $0xd8] sm:$0xff]  ;;  %v450_v16 = vld [vmem:[#allocation7 + $0xc8] sm:$0xff] }
  0x8e   : > { %494 = vmatprep.subr.mxu0 %v465_v6  ;;  %v449_v17 = vld [vmem:[#allocation7 + $0xc0] sm:$0xff]  ;;  %v447_v18 = vld [vmem:[#allocation7 + $0xb0] sm:$0xff]  ;;  %v446_v19 = vld [vmem:[#allocation7 + $0xa8] sm:$0xff] }
  0x8f   : > { %495 = vmatpush1.msra.mxu0 %v464_v7  ;;  %v444_v20 = vld [vmem:[#allocation7 + $0x98] sm:$0xff]  ;;  %v443_v21 = vld [vmem:[#allocation7 + $0x90] sm:$0xff]  ;;  %v441_v22 = vld [vmem:[#allocation7 + $0x80] sm:$0xff] }
  0x90   : > { %496 = vmatprep.subr.mxu0 %v462_v8  ;;  %v440_v23 = vld [vmem:[#allocation7 + $0x78] sm:$0xff]  ;;  %v438_v24 = vld [vmem:[#allocation7 + $0x68] sm:$0xff]  ;;  %v437_v25 = vld [vmem:[#allocation7 + $0x60] sm:$0xff] }
  0x91   : > { %497 = vmatpush1.msra.mxu0 %v461_v9  ;;  %v435_v26 = vld [vmem:[#allocation7 + $0x50] sm:$0xff]  ;;  %v434_v27 = vld [vmem:[#allocation7 + $0x48] sm:$0xff]  ;;  %v432_v28 = vld [vmem:[#allocation7 + $0x38] sm:$0xff] }
  0x92   : > { %498 = vmatprep.subr.mxu0 %v459_v10  ;;  %v431_v29 = vld [vmem:[#allocation7 + $0x30] sm:$0xff]  ;;  %v429_v30 = vld [vmem:[#allocation7 + $0x20] sm:$0xff]  ;;  %v428_v31 = vld [vmem:[#allocation7 + $0x18] sm:$0xff] }
  0x93   : > { %499 = vmatpush1.msra.mxu0 %v458_v11  ;;  %v426_v32 = vld [vmem:[#allocation7 + $0x8] sm:$0xff]  ;;  %v425_v33 = vld [vmem:[#allocation7] sm:$0xff]  ;;  %v662_v35 = vld [vmem:[#allocation8 + $0xf8] sm:$0xff] }
  0x94   : > { %500 = vmatprep.subr.mxu0 %v456_v12  ;;  %v1789_v34 = vld [vmem:[%s359_s24] sm:$0xff]  ;;  %v659_v38 = vld [vmem:[#allocation8 + $0xe0] sm:$0xff]  ;;  %v658_v39 = vld [vmem:[#allocation8 + $0xd8] sm:$0xff] }
  0x95   : > { %501 = vmatpush1.msra.mxu0 %v455_v13  ;;  %v661_v36 = vld [vmem:[#allocation8 + $0xf0] sm:$0xff]  ;;  %v660_v37 = vld [vmem:[#allocation8 + $0xe8] sm:$0xff]  ;;  %v655_v42 = vld [vmem:[#allocation8 + $0xc0] sm:$0xff] }
  0x96   : > { %502 = vmatprep.subr.mxu0 %v453_v14  ;;  %v657_v40 = vld [vmem:[#allocation8 + $0xd0] sm:$0xff]  ;;  %v656_v41 = vld [vmem:[#allocation8 + $0xc8] sm:$0xff]  ;;  %v654_v43 = vld [vmem:[#allocation8 + $0xb8] sm:$0xff] }
  0x97   : > { %503 = vmatpush1.msra.mxu0 %v452_v15  ;;  %v653_v44 = vld [vmem:[#allocation8 + $0xb0] sm:$0xff]  ;;  %v652_v45 = vld [vmem:[#allocation8 + $0xa8] sm:$0xff]  ;;  %v651_v46 = vld [vmem:[#allocation8 + $0xa0] sm:$0xff] }
  0x98   : > { %504 = vmatprep.subr.mxu0 %v450_v16  ;;  %v650_v47 = vld [vmem:[#allocation8 + $0x98] sm:$0xff]  ;;  %v649_v48 = vld [vmem:[#allocation8 + $0x90] sm:$0xff]  ;;  %v648_v49 = vld [vmem:[#allocation8 + $0x88] sm:$0xff] }
  0x99   : > { %505 = vmatpush1.msra.mxu0 %v449_v17  ;;  %v647_v50 = vld [vmem:[#allocation8 + $0x80] sm:$0xff]  ;;  %v646_v51 = vld [vmem:[#allocation8 + $0x78] sm:$0xff]  ;;  %v645_v52 = vld [vmem:[#allocation8 + $0x70] sm:$0xff] }
  0x9a   : > { %506 = vmatprep.subr.mxu0 %v447_v18  ;;  %v644_v53 = vld [vmem:[#allocation8 + $0x68] sm:$0xff]  ;;  %v643_v54 = vld [vmem:[#allocation8 + $0x60] sm:$0xff]  ;;  %v642_v55 = vld [vmem:[#allocation8 + $0x58] sm:$0xff] }
  0x9b   : > { %507 = vmatpush1.msra.mxu0 %v446_v19  ;;  %v641_v56 = vld [vmem:[#allocation8 + $0x50] sm:$0xff]  ;;  %v640_v57 = vld [vmem:[#allocation8 + $0x48] sm:$0xff]  ;;  %v639_v58 = vld [vmem:[#allocation8 + $0x40] sm:$0xff] }
  0x9c   : > { %508 = vmatprep.subr.mxu0 %v444_v20  ;;  %v638_v59 = vld [vmem:[#allocation8 + $0x38] sm:$0xff]  ;;  %v637_v60 = vld [vmem:[#allocation8 + $0x30] sm:$0xff]  ;;  %v636_v61 = vld [vmem:[#allocation8 + $0x28] sm:$0xff] }
  0x9d   : > { %509 = vmatpush1.msra.mxu0 %v443_v21  ;;  %v635_v62 = vld [vmem:[#allocation8 + $0x20] sm:$0xff]  ;;  %v634_v63 = vld [vmem:[#allocation8 + $0x18] sm:$0xff]  ;;  %v633_v0 = vld [vmem:[#allocation8 + $0x10] sm:$0xff] }
  0x9e   : > { %510 = vmatprep.subr.mxu0 %v441_v22  ;;  %v632_v1 = vld [vmem:[#allocation8 + $0x8] sm:$0xff]  ;;  %v631_v2 = vld [vmem:[#allocation8] sm:$0xff]  ;;  %v472_v4 = vld [vmem:[#allocation7 + $0x178] sm:$0xff] }
  0x9f   : > { %511 = vmatpush1.msra.mxu0 %v440_v23  ;;  %v1793_v3 = vld [vmem:[#allocation2] sm:$0xff]  ;;  %1132 = vmatpush3.msra.mxu1 %v472_v4  ;;  %v466_v7 = vld [vmem:[#allocation7 + $0x148] sm:$0xff]  ;;  %v463_v8 = vld [vmem:[#allocation7 + $0x130] sm:$0xff] }
  0xa0   : > { %512 = vmatprep.subr.mxu0 %v438_v24  ;;  %v469_v6 = vld [vmem:[#allocation7 + $0x160] sm:$0xff]  ;;  %1133 = vmatprep.subr.mxu1 %v1562_v5  ;;  %v460_v9 = vld [vmem:[#allocation7 + $0x118] sm:$0xff]  ;;  %v454_v11 = vld [vmem:[#allocation7 + $0xe8] sm:$0xff] }
  0xa1   : > { %513 = vmatpush1.msra.mxu0 %v437_v25  ;;  %1134 = vmatpush3.msra.mxu1 %v469_v6  ;;  %v457_v10 = vld [vmem:[#allocation7 + $0x100] sm:$0xff]  ;;  %v451_v12 = vld [vmem:[#allocation7 + $0xd0] sm:$0xff]  ;;  %v448_v13 = vld [vmem:[#allocation7 + $0xb8] sm:$0xff] }
  0xa2   : > { %514 = vmatprep.subr.mxu0 %v435_v26  ;;  %1135 = vmatprep.subr.mxu1 %v1562_v5  ;;  %v445_v14 = vld [vmem:[#allocation7 + $0xa0] sm:$0xff]  ;;  %v442_v15 = vld [vmem:[#allocation7 + $0x88] sm:$0xff]  ;;  %v439_v16 = vld [vmem:[#allocation7 + $0x70] sm:$0xff] }
  0xa3   : > { %515 = vmatpush1.msra.mxu0 %v434_v27  ;;  %1136 = vmatpush3.msra.mxu1 %v466_v7  ;;  %v436_v17 = vld [vmem:[#allocation7 + $0x58] sm:$0xff]  ;;  %v433_v18 = vld [vmem:[#allocation7 + $0x40] sm:$0xff]  ;;  %v430_v19 = vld [vmem:[#allocation7 + $0x28] sm:$0xff] }
  0xa4   : > { %516 = vmatprep.subr.mxu0 %v432_v28  ;;  %1137 = vmatprep.subr.mxu1 %v1562_v5  ;;  %v427_v20 = vld [vmem:[#allocation7 + $0x10] sm:$0xff]  ;;  %v764_v21 = vld [vmem:[#allocation10 + $0x78] sm:$0xff]  ;;  %v762_v23 = vld [vmem:[#allocation10 + $0x68] sm:$0xff] }
  0xa5   : > { %517 = vmatpush1.msra.mxu0 %v431_v29  ;;  %1138 = vmatpush3.msra.mxu1 %v463_v8  ;;  %v763_v22 = vld [vmem:[#allocation10 + $0x70] sm:$0xff]  ;;  %v761_v24 = vld [vmem:[#allocation10 + $0x60] sm:$0xff]  ;;  %v760_v25 = vld [vmem:[#allocation10 + $0x58] sm:$0xff] }
  0xa6   : > { %518 = vmatprep.subr.mxu0 %v429_v30  ;;  %1139 = vmatprep.subr.mxu1 %v1562_v5  ;;  %v759_v26 = vld [vmem:[#allocation10 + $0x50] sm:$0xff]  ;;  %v758_v27 = vld [vmem:[#allocation10 + $0x48] sm:$0xff]  ;;  %v757_v28 = vld [vmem:[#allocation10 + $0x40] sm:$0xff] }
  0xa7   : > { %519 = vmatpush1.msra.mxu0 %v428_v31  ;;  %1140 = vmatpush3.msra.mxu1 %v460_v9  ;;  %v756_v29 = vld [vmem:[#allocation10 + $0x38] sm:$0xff]  ;;  %v755_v30 = vld [vmem:[#allocation10 + $0x30] sm:$0xff]  ;;  %v754_v31 = vld [vmem:[#allocation10 + $0x28] sm:$0xff] }
  0xa8   : > { %520 = vmatprep.subr.mxu0 %v426_v32  ;;  %1141 = vmatprep.subr.mxu1 %v1562_v5  ;;  %v753_v32 = vld [vmem:[#allocation10 + $0x20] sm:$0xff]  ;;  %v850_v4 = vld [vmem:[#allocation11 + $0x38] sm:$0xff]  ;;  %v849_v6 = vld [vmem:[#allocation11 + $0x30] sm:$0xff] }
  0xa9   : > { %521 = vmatpush1.msra.mxu0 %v425_v33  ;;  %1142 = vmatpush3.msra.mxu1 %v457_v10  ;;  %v752_v33 = vld [vmem:[#allocation10 + $0x18] sm:$0xff]  ;;  %v848_v7 = vld [vmem:[#allocation11 + $0x28] sm:$0xff]  ;;  %v847_v8 = vld [vmem:[#allocation11 + $0x20] sm:$0xff] }
  0xaa   : > { %555 = vmatmul.mubr.f32.vlgmr.msra.gmra.mxu0 %v1789_v34  ;;  %663 = vmatprep.subr.mxu0 %v662_v35  ;;  %v750_v35 = vld [vmem:[#allocation10 + $0x8] sm:$0xff]  ;;  %v846_v9 = vld [vmem:[#allocation11 + $0x18] sm:$0xff]  ;;  %v845_v10 = vld [vmem:[#allocation11 + $0x10] sm:$0xff] }
  0xab   : > { %664 = vmatpush1.msra.mxu0 %v661_v36  ;;  %727 = vmatprep.mubr.f32.mxu0 %v1562_v5  ;;  %v749_v36 = vld [vmem:[#allocation10] sm:$0xff] }
  0xac   : > { %665 = vmatprep.subr.mxu0 %v660_v37  ;;  %1143 = vmatprep.subr.mxu1 %v1562_v5  ;;  %v858_v37 = vld [vmem:[#allocation11 + $0x78] sm:$0xff] }
  0xad   : > { %666 = vmatpush1.msra.mxu0 %v659_v38  ;;  %1144 = vmatpush3.msra.mxu1 %v454_v11  ;;  %v857_v38 = vld [vmem:[#allocation11 + $0x70] sm:$0xff]  ;;  %v844_v11 = vld [vmem:[#allocation11 + $0x8] sm:$0xff] }
  0xae   : > { %667 = vmatprep.subr.mxu0 %v658_v39  ;;  %1145 = vmatprep.subr.mxu1 %v1562_v5  ;;  %v856_v39 = vld [vmem:[#allocation11 + $0x68] sm:$0xff] }
  0xaf   : > { %668 = vmatpush1.msra.mxu0 %v657_v40  ;;  %1146 = vmatpush3.msra.mxu1 %v451_v12  ;;  %v855_v40 = vld [vmem:[#allocation11 + $0x60] sm:$0xff] }
  0xb0   : > { %669 = vmatprep.subr.mxu0 %v656_v41  ;;  %1147 = vmatprep.subr.mxu1 %v1562_v5  ;;  %v854_v41 = vld [vmem:[#allocation11 + $0x58] sm:$0xff]  ;;  %v843_v12 = vld [vmem:[#allocation11] sm:$0xff] }
  0xb1   : > { %670 = vmatpush1.msra.mxu0 %v655_v42  ;;  %1148 = vmatpush3.msra.mxu1 %v448_v13  ;;  %v475_v42 = vlaneseq }
  0xb2   : > { %671 = vmatprep.subr.mxu0 %v654_v43  ;;  %1149 = vmatprep.subr.mxu1 %v1562_v5 }
  0xb3   : > { %672 = vmatpush1.msra.mxu0 %v653_v44  ;;  %1150 = vmatpush3.msra.mxu1 %v445_v14  ;;  %v476_v43 = vshrl.u32 %v475_v42, 7 }
  0xb4   : > { %673 = vmatprep.subr.mxu0 %v652_v45  ;;  %1151 = vmatprep.subr.mxu1 %v1562_v5  ;;  %v473_v45 = vld [vmem:[%s1875_s3] sm:$0x7] }
  0xb5   : > { %674 = vmatpush1.msra.mxu0 %v651_v46  ;;  %1152 = vmatpush3.msra.mxu1 %v442_v15  ;;  %v477_v44 = vsub.s32 0, %v476_v43  ;;  %v481_v46 = vsub.s32 1, %v476_v43  ;;  %v485_v15 = vsub.s32 2, %v476_v43 }
  0xb6   : > { %675 = vmatprep.subr.mxu0 %v650_v47  ;;  %1153 = vmatprep.subr.mxu1 %v1562_v5 }
  0xb7   : > { %676 = vmatpush1.msra.mxu0 %v649_v48  ;;  %1154 = vmatpush3.msra.mxu1 %v439_v16  ;;  %v478_v48 = vrot.slane %v473_v45, %v477_v44 }
  0xb8   : > { %677 = vmatprep.subr.mxu0 %v648_v49  ;;  %1155 = vmatprep.subr.mxu1 %v1562_v5  ;;  %v482_v49 = vrot.slane %v473_v45, %v481_v46 }
  0xb9   : > { %678 = vmatpush1.msra.mxu0 %v647_v50  ;;  %1156 = vmatpush3.msra.mxu1 %v436_v17  ;;  %v486_v17 = vrot.slane %v473_v45, %v485_v15 }
  0xba   : > { %679 = vmatprep.subr.mxu0 %v646_v51  ;;  %1157 = vmatprep.subr.mxu1 %v1562_v5 }
  0xbb   : > { %680 = vmatpush1.msra.mxu0 %v645_v52  ;;  %1158 = vmatpush3.msra.mxu1 %v433_v18 }
  0xbc   : > { %681 = vmatprep.subr.mxu0 %v644_v53  ;;  %1159 = vmatprep.subr.mxu1 %v1562_v5 }
  0xbd   : > { %682 = vmatpush1.msra.mxu0 %v643_v54  ;;  %1160 = vmatpush3.msra.mxu1 %v430_v19 }
  0xbe   : > { %683 = vmatprep.subr.mxu0 %v642_v55  ;;  %1161 = vmatprep.subr.mxu1 %v1562_v5 }
  0xbf   : > { %684 = vmatpush1.msra.mxu0 %v641_v56  ;;  %1162 = vmatpush3.msra.mxu1 %v427_v20 }
  0xc0   : > { %685 = vmatprep.subr.mxu0 %v640_v57  ;;  %1164 = vmatmul.mubr.f32.vlgmr.msra.gmra.mxu1 %v1789_v34  ;;  %v751_v34 = vld [vmem:[#allocation10 + $0x10] sm:$0xff] }
  0xc1   : > { %686 = vmatpush1.msra.mxu0 %v639_v58  ;;  %1166 = vmatprep.subr.mxu1 %v1562_v5 }
  0xc2   : > { %687 = vmatprep.subr.mxu0 %v638_v59  ;;  %1198 = vmatprep.mubr.msk.f32.mxu1 %vm1563_vm0, %v1562_v5 }
  0xc3   : > { %688 = vmatpush1.msra.mxu0 %v637_v60  ;;  %1167 = vmatpush3.msra.mxu1 %v764_v21 }
  0xc4   : > { %689 = vmatprep.subr.mxu0 %v636_v61  ;;  %1168 = vmatprep.subr.mxu1 %v1562_v5 }
  0xc5   : > { %690 = vmatpush1.msra.mxu0 %v635_v62  ;;  %1169 = vmatpush3.msra.mxu1 %v763_v22 }
  0xc6   : > { %691 = vmatprep.subr.mxu0 %v634_v63  ;;  %1170 = vmatprep.subr.mxu1 %v1562_v5 }
  0xc7   : > { %692 = vmatpush1.msra.mxu0 %v633_v0  ;;  %1171 = vmatpush3.msra.mxu1 %v762_v23  ;;  %v853_v0 = vld [vmem:[#allocation11 + $0x50] sm:$0xff] }
  0xc8   : > { %693 = vmatprep.subr.mxu0 %v632_v1  ;;  %1172 = vmatprep.subr.mxu1 %v1562_v5  ;;  %v852_v1 = vld [vmem:[#allocation11 + $0x48] sm:$0xff] }
  0xc9   : > { %694 = vmatpush1.msra.mxu0 %v631_v2  ;;  %1173 = vmatpush3.msra.mxu1 %v761_v24  ;;  %v851_v2 = vld [vmem:[#allocation11 + $0x40] sm:$0xff] }
  0xca   : > { %728 = vmatmul.mubr.f32.vlgmr.msra.gmra.mxu0 %v1793_v3  ;;  %1201 = vmatprep.subr.mxu0 %v1562_v5 }
  0xcb   : > { %1233 = vmatprep.mubr.msk.f32.mxu0 %vm1563_vm0, %v1562_v5  ;;  %1174 = vmatprep.subr.mxu1 %v1562_v5 }
  0xcc   : > { %1175 = vmatpush3.msra.mxu1 %v760_v25  ;;  %1202 = vmatpush3.msra.mxu0 %v858_v37 }
  0xcd   : > { %1176 = vmatprep.subr.mxu1 %v1562_v5  ;;  %1203 = vmatprep.subr.mxu0 %v1562_v5 }
  0xce   : > { %1177 = vmatpush3.msra.mxu1 %v759_v26  ;;  %1204 = vmatpush3.msra.mxu0 %v857_v38 }
  0xcf   : > { %1178 = vmatprep.subr.mxu1 %v1562_v5  ;;  %1205 = vmatprep.subr.mxu0 %v1562_v5 }
  0xd0   : > { %1179 = vmatpush3.msra.mxu1 %v758_v27  ;;  %1206 = vmatpush3.msra.mxu0 %v856_v39  ;;  %v1077_v27 = vld [vmem:[%s1879_s7] ss:$0 sm:$0xff] }
  0xd1   : > { %1180 = vmatprep.subr.mxu1 %v1562_v5  ;;  %1207 = vmatprep.subr.mxu0 %v1562_v5 }
  0xd2   : > { %1181 = vmatpush3.msra.mxu1 %v757_v28  ;;  %1208 = vmatpush3.msra.mxu0 %v855_v40 }
  0xd3   : > { %1182 = vmatprep.subr.mxu1 %v1562_v5  ;;  %1209 = vmatprep.subr.mxu0 %v1562_v5 }
  0xd4   : > { %1183 = vmatpush3.msra.mxu1 %v756_v29  ;;  %1210 = vmatpush3.msra.mxu0 %v854_v41 }
  0xd5   : > { %1184 = vmatprep.subr.mxu1 %v1562_v5  ;;  %1211 = vmatprep.subr.mxu0 %v1562_v5 }
  0xd6   : > { %1185 = vmatpush3.msra.mxu1 %v755_v30  ;;  %1212 = vmatpush3.msra.mxu0 %v853_v0 }
  0xd7   : > { %1186 = vmatprep.subr.mxu1 %v1562_v5  ;;  %1213 = vmatprep.subr.mxu0 %v1562_v5 }
  0xd8   : > { %1187 = vmatpush3.msra.mxu1 %v754_v31  ;;  %1214 = vmatpush3.msra.mxu0 %v852_v1 }
  0xd9   : > { %1188 = vmatprep.subr.mxu1 %v1562_v5  ;;  %1215 = vmatprep.subr.mxu0 %v1562_v5 }
  0xda   : > { %1189 = vmatpush3.msra.mxu1 %v753_v32  ;;  %1216 = vmatpush3.msra.mxu0 %v851_v2 }
  0xdb   : > { %1190 = vmatprep.subr.mxu1 %v1562_v5  ;;  %1217 = vmatprep.subr.mxu0 %v1562_v5 }
  0xdc   : > { %1191 = vmatpush3.msra.mxu1 %v752_v33  ;;  %1218 = vmatpush3.msra.mxu0 %v850_v4 }
  0xdd   : > { %1192 = vmatprep.subr.mxu1 %v1562_v5  ;;  %1219 = vmatprep.subr.mxu0 %v1562_v5 }
  0xde   : > { %1193 = vmatpush3.msra.mxu1 %v751_v34  ;;  %1220 = vmatpush3.msra.mxu0 %v849_v6 }
  0xdf   : > { %1194 = vmatprep.subr.mxu1 %v1562_v5  ;;  %1221 = vmatprep.subr.mxu0 %v1562_v5 }
  0xe0   : > { %1195 = vmatpush3.msra.mxu1 %v750_v35  ;;  %1222 = vmatpush3.msra.mxu0 %v848_v7 }
  0xe1   : > { %1196 = vmatprep.subr.mxu1 %v1562_v5  ;;  %1223 = vmatprep.subr.mxu0 %v1562_v5 }
  0xe2   : > { %1197 = vmatpush3.msra.mxu1 %v749_v36  ;;  %1224 = vmatpush3.msra.mxu0 %v847_v8 }
  0xe3   : > { %1225 = vmatprep.subr.mxu0 %v1562_v5 }
  0xe4   : > { %1226 = vmatpush3.msra.mxu0 %v846_v9 }
  0xe5   : > { %1227 = vmatprep.subr.mxu0 %v1562_v5 }
  0xe6   : > { %1228 = vmatpush3.msra.mxu0 %v845_v10 }
  0xe7   : > { %1229 = vmatprep.subr.mxu0 %v1562_v5 }
  0xe8   : > { %1230 = vmatpush3.msra.mxu0 %v844_v11 }
  0xe9   : > { %1231 = vmatprep.subr.mxu0 %v1562_v5 }
  0xea   : > { %1232 = vmatpush3.msra.mxu0 %v843_v12 }
 0x16a   : > { %v556_v47 = vpop.f32.mrf.mxu0 }
 0x16b   : > { %v557_v51 = vadd.f32 %v556_v47, %v478_v48 }
 0x16c   : > { %v558_v50 = vpop.f32.mrf.mxu0 }
 0x16d   : > { %v559_v53 = vadd.f32 %v558_v50, %v482_v49 }
 0x180   : > { %v627_v62 = vpop.f32.mrf.mxu1 }
 0x181   : > { %v628_v18 = vadd.f32 %v627_v62, %v486_v17 }
 0x182   : > { %v1165_v63 = vpop.f32.mrf.mxu1 }
 0x18a   : > { %v729_v52 = vpop.f32.mrf.mxu0 }
 0x18b   : > { %v734_v54 = vadd.f32 %v729_v52, %v557_v51 }
 0x18c   : > { %v731_v55 = vpop.f32.mrf.mxu0 }
 0x18d   : > { %v741_v56 = vadd.f32 %v731_v55, %v559_v53  ;;  %v1075_v13 = vmul.f32 -1.442695, %v734_v54 }
 0x18f   : > { %v1076_v57 = vmul.f32 -1.442695, %v741_v56 }
 0x191   : > { %1334 = vpow2.f32 %v1076_v57 }
 0x19e   : > { %v1335_v58 = vpop.eup %1334 }
 0x19f   : > { %v745_v59 = vadd.f32 1.0, %v1335_v58 }
 0x1a1   : > { %1336 = vrcp.f32 %v745_v59 }
 0x1a2   : > { %1338 = vpow2.f32 %v1075_v13 }
 0x1ae   : > { %v1337_v60 = vpop.eup %1336 }
 0x1af   : > { %v748_v61 = vmul.f32 %v1337_v60, %v1793_v3  ;;  %v1339_v14 = vpop.eup %1338 }
 0x1b0   : > { %v738_v16 = vadd.f32 1.0, %v1339_v14 }
 0x1b1   : > { %1199 = vmatmul.mubr.f32.vlgmr.msra.gmra.mxu1 %v748_v61 }
 0x1b2   : > { %1340 = vrcp.f32 %v738_v16 }
 0x1bf   : > { %v1341_v22 = vpop.eup %1340 }
 0x1c0   : > { %v837_v23 = vsub.f32 1.0, %v1341_v22 }
 0x1c2   : > { %v838_v25 = vmul.f32 %v837_v23, %v1793_v3 }
 0x271   : > { %v831_v19 = vpop.f32.mrf.mxu1 }
 0x272   : > { %v835_v20 = vadd.f32 %v831_v19, %v628_v18 }
 0x273   : > { %v1200_v21 = vpop.f32.mrf.mxu1 }
 0x274   : > { %1342 = vtanh.f32 %v835_v20 }
 0x281   : > { %v1343_v24 = vpop.eup %1342 }
 0x282   : > { %v839_v5 = vmul.f32 %v1343_v24, %v1341_v22 }
 0x284   : > { %v840_v26 = vadd.f32 %v839_v5, %v838_v25 }
 0x286   : > { %841 = vst [vmem:[#allocation2] sm:$0xff] %v840_v26  ;;  %842 = vst [vmem:[%s1881_s9] sm:$0xff] %v840_v26  ;;  %1234 = vmatmul.mubr.f32.vlgmr.msra.gmra.mxu0 %v840_v26 }
 0x346   : > { %v932_v28 = vpop.f32.mrf.mxu0 }
 0x347   : > { %v933_v29 = vadd.f32 %v1077_v27, %v932_v28 }
 0x348   : > { %v1235_v30 = vpop.f32.mrf.mxu0 }
 0x349   : > { %936 = vst [vmem:[%s1781_s17] sm:$0xff] %v933_v29 }
 0x34a PF: > { %p23_p11 = scmp.ge.s32.totalorder %s1709_s22, 10   ;;  %s1899_s30 = smov %s1540_s10 }
 0x34b   : > { %s1900_s10 = smov %s1544_s11  ;;  %s1901_s11 = smov %s1720_s18 }
 0x34c   : > { %s1902_s12 = smov %s1709_s22  ;;  %25 = sbr.rel (!%p23_p11) target bundleno = 6 (0x6), region = 124 }
 0x351   :  { %962 = vsyncpa [#allocation4], 1 }
 0x352   :  { %964 = vsyncpa [#allocation4 + $0x1], 1 }
 0x353   :  { %965 = vsyncpa [#allocation6], 1 }
 0x354   :  { %966 = vsyncpa [#allocation9], 1 }
 0x355   :  { %967 = vsyncpa [#allocation12], 1 }

</bundles_post_ra>
